<compile_context>
chip_gen: v6e
topology: v6e:2x2x1
jax: 0.10.0
libtpu: 0.0.40
codegen_flags: <defaults>
</compile_context>

<pallas_src>
import jax
import jax.numpy as jnp
import numpy as np
from jax import lax
from jax.experimental import pallas as pl
from jax.experimental.pallas import tpu as pltpu


def _round_up(x, m):
    return (x + m - 1) // m * m


def _rnn_pool_kernel(
    lmax_ref,                 # SMEM (num_tiles,) int32 : per-tile max seqlen
    xp_ref,                   # (T, Bt, 2*Hp) bf16     : merged fwd/bwd input projection
    whhf_ref, whhb_ref,       # (Hp, Hp) bf16          : W_hh^T (zero padded)
    len_ref,                  # (Bt, 1) int32          : per-sequence lengths
    tgt_end_ref,              # (Bt*Wp, 1) int32       : flat history row for fwd pooling (-1 = invalid)
    tgt_start_ref,            # (Bt*Wp, 1) int32       : flat history row for bwd pooling (-1 = invalid)
    out_ref,                  # (Bt*Wp, 2*Hp) f32
    hf_s, hb_s,               # scratch (T, Bt, Hp) f32 : per-tile hidden-state histories
):
    T, Bt, Hp = hf_s.shape
    R = out_ref.shape[0]                      # Bt * Wp
    C = T * Bt
    lmax = lmax_ref[pl.program_id(0)]
    len_col = len_ref[...]                    # (Bt, 1) int32
    whh_f = whhf_ref[...]                     # hoisted out of the recurrence loop
    whh_b = whhb_ref[...]

    # Zero only the tail rows t >= lmax: rows < lmax are fully rewritten by the
    # masked recurrence stores below, and the pooling matmul multiplies rows
    # >= lmax by 0.0 (so they must be finite, never uninitialized).
    zero_blk = jnp.zeros((Bt, Hp), jnp.float32)

    def zero_tail(t, c):
        hf_s[t] = zero_blk
        hb_s[t] = zero_blk
        return c

    lax.fori_loop(lmax, T, zero_tail, 0)

    # Fused forward/backward recurrence over the batch tile: iteration i updates
    # forward at t = i and backward at t = lmax-1-i (two independent chains, so
    # the two MXU pushes / tanhs overlap).  Per-sequence masking (t < len)
    # reproduces pack_padded_sequence; padded history rows stay exactly 0
    # (pad_packed_sequence semantics).  Carry stays f32 for accuracy.
    def step(i, carry):
        h_f, h_b = carry                      # (Bt, Hp) f32 each
        tf = i
        tb = lmax - 1 - i
        xp_f = xp_ref[tf]                     # (Bt, 2*Hp) bf16
        xp_b = xp_ref[tb]
        pre_f = xp_f[:, :Hp].astype(jnp.float32) + jnp.dot(
            h_f.astype(jnp.bfloat16), whh_f, preferred_element_type=jnp.float32)
        pre_b = xp_b[:, Hp:].astype(jnp.float32) + jnp.dot(
            h_b.astype(jnp.bfloat16), whh_b, preferred_element_type=jnp.float32)
        cand_f = jnp.tanh(pre_f)
        cand_b = jnp.tanh(pre_b)
        m_f = tf < len_col                    # (Bt, 1) bool
        m_b = tb < len_col
        hf_s[tf] = jnp.where(m_f, cand_f, 0.0)
        hb_s[tb] = jnp.where(m_b, cand_b, 0.0)
        return (jnp.where(m_f, cand_f, h_f), jnp.where(m_b, cand_b, h_b))

    h0 = jnp.zeros((Bt, Hp), jnp.float32)
    lax.fori_loop(0, lmax, step, (h0, h0))

    # Word-span pooling on the MXU: block-diagonal one-hot (R, C) built with a
    # single compare per element (target flat row = t*Bt + b, precomputed in the
    # wrapper; -1 never matches => invalid / padded / post-break slots pool to 0),
    # then one bf16 matmul per direction against the flattened history.
    c_iota = lax.broadcasted_iota(jnp.int32, (R, C), 1)
    oh_f = jnp.where(c_iota == tgt_end_ref[...], 1.0, 0.0).astype(jnp.bfloat16)
    oh_b = jnp.where(c_iota == tgt_start_ref[...], 1.0, 0.0).astype(jnp.bfloat16)
    hist_f = hf_s[...].reshape(C, Hp).astype(jnp.bfloat16)
    hist_b = hb_s[...].reshape(C, Hp).astype(jnp.bfloat16)
    # Two lane-aligned half stores (both offsets are multiples of 128 lanes).
    out_ref[:, :Hp] = jnp.dot(oh_f, hist_f, preferred_element_type=jnp.float32)
    out_ref[:, Hp:] = jnp.dot(oh_b, hist_b, preferred_element_type=jnp.float32)


@jax.jit
def pooling_rnn_global(x, seqlens, start_ids, end_ids,
                       w_ih_f, w_hh_f, b_ih_f, b_hh_f,
                       w_ih_b, w_hh_b, b_ih_b, b_hh_b):
    """Forward pass of PoolingRNNGlobal for a single-layer bidirectional tanh RNN."""
    B, T, D = x.shape
    H = w_hh_f.shape[0]
    Wmax = start_ids.shape[1]
    f32, bf16 = jnp.float32, jnp.bfloat16

    Bt = 8                                    # batch tile (sublane group)
    Bp = _round_up(max(B, Bt), Bt)
    Hp = _round_up(max(H, 128), 128)          # lane-dense hidden width
    Wp = _round_up(max(Wmax, 8), 8)
    num_tiles = Bp // Bt

    # ---- merged + hoisted input projection, already padded to (T, Bp, 2*Hp):
    # pad x to Bp batch rows and scatter W_ih^T / bias into a (D, 2*Hp) weight so
    # the GEMM directly emits the padded layout (no extra activation copies).
    x_pad = jnp.pad(x, ((0, Bp - B), (0, 0), (0, 0)))
    w_cat = jnp.zeros((D, 2 * Hp), f32)
    w_cat = w_cat.at[:, :H].set(w_ih_f.T).at[:, Hp:Hp + H].set(w_ih_b.T)
    b_cat = jnp.zeros((2 * Hp,), f32)
    b_cat = b_cat.at[:H].set(b_ih_f + b_hh_f).at[Hp:Hp + H].set(b_ih_b + b_hh_b)
    xp = jnp.dot(x_pad.reshape(Bp * T, D).astype(bf16), w_cat.astype(bf16),
                 preferred_element_type=f32) + b_cat
    xp = xp.reshape(Bp, T, 2 * Hp).transpose(1, 0, 2).astype(bf16)   # (T, Bp, 2*Hp)

    # ---- recurrent weights: transposed, zero-padded to (Hp, Hp), bf16 for MXU
    # (padded hidden dims see all-zero weights/bias => tanh(0) = 0, exactly inert).
    whhf = jnp.zeros((Hp, Hp), f32).at[:H, :H].set(w_hh_f.T).astype(bf16)
    whhb = jnp.zeros((Hp, Hp), f32).at[:H, :H].set(w_hh_b.T).astype(bf16)

    # ---- lengths / per-tile max length (scalar prefetch)
    seq_i32 = seqlens.astype(jnp.int32)
    lens = jnp.zeros((Bp, 1), jnp.int32).at[:B, 0].set(seq_i32)
    seq_pad = jnp.zeros((Bp,), jnp.int32).at[:B].set(seq_i32)
    lmax_tiles = jnp.max(seq_pad.reshape(num_tiles, Bt), axis=1)     # (num_tiles,)

    # ---- pooling targets: flat history row id t*Bt + (b % Bt); -1 after the
    # first start_id == -1 (break semantics of the reference python loop),
    # for padded batch rows and for padded word slots.
    valid = jnp.cumsum((start_ids < 0).astype(jnp.int32), axis=1) == 0   # (B, Wmax)
    b_in_tile = (jnp.arange(B, dtype=jnp.int32) % Bt)[:, None]
    tgt_end_b = jnp.where(valid, end_ids.astype(jnp.int32) * Bt + b_in_tile, -1)
    tgt_start_b = jnp.where(valid, start_ids.astype(jnp.int32) * Bt + b_in_tile, -1)
    tgt_end = jnp.full((Bp, Wp), -1, jnp.int32).at[:B, :Wmax].set(tgt_end_b)
    tgt_start = jnp.full((Bp, Wp), -1, jnp.int32).at[:B, :Wmax].set(tgt_start_b)
    tgt_end = tgt_end.reshape(Bp * Wp, 1)
    tgt_start = tgt_start.reshape(Bp * Wp, 1)

    grid_spec = pltpu.PrefetchScalarGridSpec(
        num_scalar_prefetch=1,
        grid=(num_tiles,),
        in_specs=[
            pl.BlockSpec((T, Bt, 2 * Hp), lambda i, lm: (0, i, 0)),   # xp (streamed per tile)
            pl.BlockSpec((Hp, Hp), lambda i, lm: (0, 0)),             # W_hh_fwd^T
            pl.BlockSpec((Hp, Hp), lambda i, lm: (0, 0)),             # W_hh_bwd^T
            pl.BlockSpec((Bt, 1), lambda i, lm: (i, 0)),              # seqlens
            pl.BlockSpec((Bt * Wp, 1), lambda i, lm: (i, 0)),         # fwd pooling targets
            pl.BlockSpec((Bt * Wp, 1), lambda i, lm: (i, 0)),         # bwd pooling targets
        ],
        out_specs=pl.BlockSpec((Bt * Wp, 2 * Hp), lambda i, lm: (i, 0)),
        scratch_shapes=[
            pltpu.VMEM((T, Bt, Hp), jnp.float32),                     # h_fwd history
            pltpu.VMEM((T, Bt, Hp), jnp.float32),                     # h_bwd history
        ],
    )

    # Explicit VMEM budget (default scoped limits can be tight) + cost hint.
    vmem_est = (2 * (T * Bt * 2 * Hp * 2)            # xp block (double buffered, bf16)
                + 2 * 2 * (Hp * Hp * 2)              # weights (double buffered, bf16)
                + 2 * (Bt * Wp * 2 * Hp * 4)         # output block (double buffered)
                + 2 * (T * Bt * Hp * 4)              # history scratch (f32)
                + 2 * (T * Bt * Hp * 2)              # bf16 history copies for matmul
                + 2 * (Bt * Wp) * (T * Bt) * 6       # one-hot intermediates
                + (1 << 20))
    vmem_limit = int(min(max(2 * vmem_est, 32 * 1024 * 1024), 100 * 1024 * 1024))
    cost = pl.CostEstimate(
        flops=4 * T * Bp * Hp * Hp + 4 * Wp * T * Bt * Hp * Bp,
        transcendentals=2 * T * Bp * Hp,
        bytes_accessed=(T * Bp * 2 * Hp * 2 + 2 * Hp * Hp * 2
                        + Bp * Wp * 2 * Hp * 4 + Bp * Wp * 8 + Bp * 4),
    )

    out_k = pl.pallas_call(
        _rnn_pool_kernel,
        out_shape=jax.ShapeDtypeStruct((Bp * Wp, 2 * Hp), f32),
        grid_spec=grid_spec,
        compiler_params=pltpu.CompilerParams(
            dimension_semantics=("parallel",),
            vmem_limit_bytes=vmem_limit),
        cost_estimate=cost,
    )(lmax_tiles, xp, whhf, whhb, lens, tgt_end, tgt_start)

    out = out_k.reshape(Bp, Wp, 2 * Hp)[:B, :Wmax]                    # (B, Wmax, 2*Hp)
    return jnp.concatenate([out[..., :H], out[..., Hp:Hp + H]], axis=-1)


def _reference(x, seqlens, start_ids, end_ids, wihf, whhf, bf, wihb, whhb, bb):
    """NumPy replica of the PyTorch forward (pack/pad semantics + break)."""
    x = np.asarray(x, np.float64)
    B, T, D = x.shape
    H = whhf.shape[0]
    Wmax = start_ids.shape[1]
    out = np.zeros((B, Wmax, 2 * H), np.float64)
    for b in range(B):
        L = int(seqlens[b])
        hf = np.zeros((T, H)); h = np.zeros(H)
        for t in range(L):
            h = np.tanh(x[b, t] @ wihf.T + bf + h @ whhf.T)
            hf[t] = h
        hb = np.zeros((T, H)); h = np.zeros(H)
        for t in range(L - 1, -1, -1):
            h = np.tanh(x[b, t] @ wihb.T + bb + h @ whhb.T)
            hb[t] = h
        for i in range(Wmax):
            s = int(start_ids[b, i])
            if s == -1:
                break
            e = int(end_ids[b, i])
            out[b, i] = np.concatenate([hf[e], hb[s]])
    return out


if __name__ == "__main__":
    B, T, D, H, Wmax = 2, 8, 32, 16, 5   # D == 2*H (the module's pooling concat implies it)

    key = jax.random.PRNGKey(0)
    ks = jax.random.split(key, 9)
    x = jax.random.normal(ks[0], (B, T, D), jnp.float32)
    # nn.RNN(D, H, bidirectional=True, batch_first=True) parameter shapes.
    w_ih_f = jax.random.normal(ks[1], (H, D), jnp.float32) * 0.2
    w_hh_f = jax.random.normal(ks[2], (H, H), jnp.float32) * 0.2
    b_ih_f = jax.random.normal(ks[3], (H,), jnp.float32) * 0.1
    b_hh_f = jax.random.normal(ks[4], (H,), jnp.float32) * 0.1
    w_ih_b = jax.random.normal(ks[5], (H, D), jnp.float32) * 0.2
    w_hh_b = jax.random.normal(ks[6], (H, H), jnp.float32) * 0.2
    b_ih_b = jax.random.normal(ks[7], (H,), jnp.float32) * 0.1
    b_hh_b = jax.random.normal(ks[8], (H,), jnp.float32) * 0.1

    # batch['tokens'] lengths, batch['word2token_start_ids'], batch['word2token_end_ids']
    seqlens = jnp.array([8, 6], jnp.int32)
    start_ids = jnp.array([[0, 2, 4, 6, -1],
                           [0, 2, 4, -1, -1]], jnp.int32)
    end_ids = jnp.array([[1, 3, 5, 7, -1],
                         [1, 3, 5, -1, -1]], jnp.int32)

    out = pooling_rnn_global(x, seqlens, start_ids, end_ids,
                             w_ih_f, w_hh_f, b_ih_f, b_hh_f,
                             w_ih_b, w_hh_b, b_ih_b, b_hh_b)
    out = jax.block_until_ready(out)

    ref = _reference(np.asarray(x), np.asarray(seqlens),
                     np.asarray(start_ids), np.asarray(end_ids),
                     np.asarray(w_ih_f), np.asarray(w_hh_f),
                     np.asarray(b_ih_f) + np.asarray(b_hh_f),
                     np.asarray(w_ih_b), np.asarray(w_hh_b),
                     np.asarray(b_ih_b) + np.asarray(b_hh_b))
    np.testing.assert_allclose(np.asarray(out), ref, atol=5e-2, rtol=5e-2)

    print("KERNEL_OK")
</pallas_src>

<mosaic_0001>
module attributes {stable_mosaic.version = 11 : i64} {
  func.func @_rnn_pool_kernel(%arg0: i32, %arg1: memref<1xi32, #tpu.memory_space<smem>>, %arg2: memref<8x8x256xbf16, #tpu.memory_space<vmem>>, %arg3: memref<128x128xbf16, #tpu.memory_space<vmem>>, %arg4: memref<128x128xbf16, #tpu.memory_space<vmem>>, %arg5: memref<8x1xi32, #tpu.memory_space<vmem>>, %arg6: memref<64x1xi32, #tpu.memory_space<vmem>>, %arg7: memref<64x1xi32, #tpu.memory_space<vmem>>, %arg8: memref<64x256xf32, #tpu.memory_space<vmem>>, %arg9: memref<8x8x128xf32, #tpu.memory_space<vmem>>, %arg10: memref<8x8x128xf32, #tpu.memory_space<vmem>>) attributes {dimension_semantics = [#tpu.dimension_semantics<parallel>], iteration_bounds = array<i64: 1>, scalar_prefetch = 1 : i64, scratch_operands = 2 : i64, tpu.core_type = #tpu.core_type<tc>, window_params = [{transform_indices = @transform_0, window_bounds = array<i64: 8, 8, 256>}, {pipeline_mode = #tpu.pipeline_mode<synchronous>, transform_indices = @transform_1, window_bounds = array<i64: 128, 128>}, {pipeline_mode = #tpu.pipeline_mode<synchronous>, transform_indices = @transform_2, window_bounds = array<i64: 128, 128>}, {transform_indices = @transform_3, window_bounds = array<i64: 8, 1>}, {transform_indices = @transform_4, window_bounds = array<i64: 64, 1>}, {transform_indices = @transform_5, window_bounds = array<i64: 64, 1>}, {transform_indices = @transform_6, window_bounds = array<i64: 64, 256>}]} {
    %0 = arith.index_cast %arg0 : i32 to index
    %1 = memref.load %arg1[%0] : memref<1xi32, #tpu.memory_space<smem>>
    %c0 = arith.constant 0 : index
    %c0_0 = arith.constant 0 : index
    %2 = vector.load %arg5[%c0, %c0_0] : memref<8x1xi32, #tpu.memory_space<vmem>>, vector<8x1xi32>
    %c0_1 = arith.constant 0 : index
    %c0_2 = arith.constant 0 : index
    %3 = vector.load %arg3[%c0_1, %c0_2] : memref<128x128xbf16, #tpu.memory_space<vmem>>, vector<128x128xbf16>
    %c0_3 = arith.constant 0 : index
    %c0_4 = arith.constant 0 : index
    %4 = vector.load %arg4[%c0_3, %c0_4] : memref<128x128xbf16, #tpu.memory_space<vmem>>, vector<128x128xbf16>
    %cst = arith.constant 0.000000e+00 : f32
    %5 = vector.broadcast %cst : f32 to vector<8x128xf32>
    %c0_i32 = arith.constant 0 : i32
    %c8_i32 = arith.constant 8 : i32
    %6 = arith.subi %c8_i32, %1 : i32
    %7 = arith.addi %1, %6 : i32
    %c1_i32 = arith.constant 1 : i32
    scf.for %arg11 = %1 to %7 step %c1_i32  : i32 {
      %37 = arith.index_cast %arg11 : i32 to index
      %c0_27 = arith.constant 0 : index
      %c0_28 = arith.constant 0 : index
      %38 = vector.load %arg9[%37, %c0_27, %c0_28] : memref<8x8x128xf32, #tpu.memory_space<vmem>>, vector<1x8x128xf32>
      %39 = vector.shape_cast %38 : vector<1x8x128xf32> to vector<8x128xf32>
      %40 = vector.shape_cast %5 : vector<8x128xf32> to vector<1x8x128xf32>
      tpu.vector_store %arg9[%37, %c0_27, %c0_28], %40 {strides = array<i32>} : memref<8x8x128xf32, #tpu.memory_space<vmem>>, vector<1x8x128xf32>,
      %41 = arith.index_cast %arg11 : i32 to index
      %c0_29 = arith.constant 0 : index
      %c0_30 = arith.constant 0 : index
      %42 = vector.load %arg10[%41, %c0_29, %c0_30] : memref<8x8x128xf32, #tpu.memory_space<vmem>>, vector<1x8x128xf32>
      %43 = vector.shape_cast %42 : vector<1x8x128xf32> to vector<8x128xf32>
      %44 = vector.shape_cast %5 : vector<8x128xf32> to vector<1x8x128xf32>
      tpu.vector_store %arg10[%41, %c0_29, %c0_30], %44 {strides = array<i32>} : memref<8x8x128xf32, #tpu.memory_space<vmem>>, vector<1x8x128xf32>,
    }
    %cst_5 = arith.constant 0.000000e+00 : f32
    %8 = vector.broadcast %cst_5 : f32 to vector<8x128xf32>
    %c0_i32_6 = arith.constant 0 : i32
    %9 = arith.subi %1, %c0_i32_6 : i32
    %10 = arith.addi %c0_i32_6, %9 : i32
    %c1_i32_7 = arith.constant 1 : i32
    %11:2 = scf.for %arg11 = %c0_i32_6 to %10 step %c1_i32_7 iter_args(%arg12 = %8, %arg13 = %8) -> (vector<8x128xf32>, vector<8x128xf32>)  : i32 {
      %c1_i32_27 = arith.constant 1 : i32
      %37 = arith.subi %1, %c1_i32_27 : i32
      %38 = arith.subi %37, %arg11 : i32
      %39 = arith.index_cast %arg11 : i32 to index
      %c0_28 = arith.constant 0 : index
      %c0_29 = arith.constant 0 : index
      %40 = vector.load %arg2[%39, %c0_28, %c0_29] : memref<8x8x256xbf16, #tpu.memory_space<vmem>>, vector<1x8x256xbf16>
      %41 = vector.shape_cast %40 : vector<1x8x256xbf16> to vector<8x256xbf16>
      %42 = arith.index_cast %38 : i32 to index
      %c0_30 = arith.constant 0 : index
      %c0_31 = arith.constant 0 : index
      %43 = vector.load %arg2[%42, %c0_30, %c0_31] : memref<8x8x256xbf16, #tpu.memory_space<vmem>>, vector<1x8x256xbf16>
      %44 = vector.shape_cast %43 : vector<1x8x256xbf16> to vector<8x256xbf16>
      %45 = vector.extract_strided_slice %41 {offsets = [0, 0], sizes = [8, 128], strides = [1, 1]} : vector<8x256xbf16> to vector<8x128xbf16>
      %46 = arith.extf %45 : vector<8x128xbf16> to vector<8x128xf32>
      %47 = arith.truncf %arg12 : vector<8x128xf32> to vector<8x128xbf16>
      %cst_32 = arith.constant dense<0.000000e+00> : vector<8x128xf32>
      %48 = tpu.matmul %47, %3, %cst_32 {dimension_numbers = #tpu.dot_dimension_numbers<[1], [0], [0], [1], [0, 0, 1, 1], [], []>} : vector<8x128xbf16>, vector<128x128xbf16>, vector<8x128xf32> -> vector<8x128xf32>
      %49 = arith.addf %46, %48 : vector<8x128xf32>
      %50 = vector.extract_strided_slice %44 {offsets = [0, 128], sizes = [8, 128], strides = [1, 1]} : vector<8x256xbf16> to vector<8x128xbf16>
      %51 = arith.extf %50 : vector<8x128xbf16> to vector<8x128xf32>
      %52 = arith.truncf %arg13 : vector<8x128xf32> to vector<8x128xbf16>
      %cst_33 = arith.constant dense<0.000000e+00> : vector<8x128xf32>
      %53 = tpu.matmul %52, %4, %cst_33 {dimension_numbers = #tpu.dot_dimension_numbers<[1], [0], [0], [1], [0, 0, 1, 1], [], []>} : vector<8x128xbf16>, vector<128x128xbf16>, vector<8x128xf32> -> vector<8x128xf32>
      %54 = arith.addf %51, %53 : vector<8x128xf32>
      %55 = math.tanh %49 : vector<8x128xf32>
      %56 = math.tanh %54 : vector<8x128xf32>
      %57 = vector.broadcast %arg11 : i32 to vector<8x1xi32>
      %58 = arith.cmpi slt, %57, %2 : vector<8x1xi32>
      %59 = vector.broadcast %38 : i32 to vector<8x1xi32>
      %60 = arith.cmpi slt, %59, %2 : vector<8x1xi32>
      %cst_34 = arith.constant 0.000000e+00 : f32
      %61 = vector.shape_cast %58 : vector<8x1xi1> to vector<8x1xi1>
      %62 = vector.broadcast %61 : vector<8x1xi1> to vector<8x128xi1>
      %63 = vector.broadcast %cst_34 : f32 to vector<8x128xf32>
      %64 = arith.select %62, %55, %63 : vector<8x128xi1>, vector<8x128xf32>
      %65 = arith.index_cast %arg11 : i32 to index
      %c0_35 = arith.constant 0 : index
      %c0_36 = arith.constant 0 : index
      %66 = vector.load %arg9[%65, %c0_35, %c0_36] : memref<8x8x128xf32, #tpu.memory_space<vmem>>, vector<1x8x128xf32>
      %67 = vector.shape_cast %66 : vector<1x8x128xf32> to vector<8x128xf32>
      %68 = vector.shape_cast %64 : vector<8x128xf32> to vector<1x8x128xf32>
      tpu.vector_store %arg9[%65, %c0_35, %c0_36], %68 {strides = array<i32>} : memref<8x8x128xf32, #tpu.memory_space<vmem>>, vector<1x8x128xf32>,
      %cst_37 = arith.constant 0.000000e+00 : f32
      %69 = vector.shape_cast %60 : vector<8x1xi1> to vector<8x1xi1>
      %70 = vector.broadcast %69 : vector<8x1xi1> to vector<8x128xi1>
      %71 = vector.broadcast %cst_37 : f32 to vector<8x128xf32>
      %72 = arith.select %70, %56, %71 : vector<8x128xi1>, vector<8x128xf32>
      %73 = arith.index_cast %38 : i32 to index
      %c0_38 = arith.constant 0 : index
      %c0_39 = arith.constant 0 : index
      %74 = vector.load %arg10[%73, %c0_38, %c0_39] : memref<8x8x128xf32, #tpu.memory_space<vmem>>, vector<1x8x128xf32>
      %75 = vector.shape_cast %74 : vector<1x8x128xf32> to vector<8x128xf32>
      %76 = vector.shape_cast %72 : vector<8x128xf32> to vector<1x8x128xf32>
      tpu.vector_store %arg10[%73, %c0_38, %c0_39], %76 {strides = array<i32>} : memref<8x8x128xf32, #tpu.memory_space<vmem>>, vector<1x8x128xf32>,
      %77 = vector.shape_cast %58 : vector<8x1xi1> to vector<8x1xi1>
      %78 = vector.broadcast %77 : vector<8x1xi1> to vector<8x128xi1>
      %79 = arith.select %78, %55, %arg12 : vector<8x128xi1>, vector<8x128xf32>
      %80 = vector.shape_cast %60 : vector<8x1xi1> to vector<8x1xi1>
      %81 = vector.broadcast %80 : vector<8x1xi1> to vector<8x128xi1>
      %82 = arith.select %81, %56, %arg13 : vector<8x128xi1>, vector<8x128xf32>
      scf.yield %79, %82 : vector<8x128xf32>, vector<8x128xf32>
    }
    %12 = tpu.iota {dimensions = array<i32: 1>} : vector<64x64xi32>
    %c0_8 = arith.constant 0 : index
    %c0_9 = arith.constant 0 : index
    %13 = vector.load %arg6[%c0_8, %c0_9] : memref<64x1xi32, #tpu.memory_space<vmem>>, vector<64x1xi32>
    %14 = vector.broadcast %13 : vector<64x1xi32> to vector<64x64xi32>
    %15 = arith.cmpi eq, %12, %14 : vector<64x64xi32>
    %cst_10 = arith.constant 1.000000e+00 : f32
    %cst_11 = arith.constant 0.000000e+00 : f32
    %16 = vector.broadcast %cst_10 : f32 to vector<64x64xf32>
    %17 = vector.broadcast %cst_11 : f32 to vector<64x64xf32>
    %18 = arith.select %15, %16, %17 : vector<64x64xi1>, vector<64x64xf32>
    %19 = arith.truncf %18 : vector<64x64xf32> to vector<64x64xbf16>
    %c0_12 = arith.constant 0 : index
    %c0_13 = arith.constant 0 : index
    %20 = vector.load %arg7[%c0_12, %c0_13] : memref<64x1xi32, #tpu.memory_space<vmem>>, vector<64x1xi32>
    %21 = vector.broadcast %20 : vector<64x1xi32> to vector<64x64xi32>
    %22 = arith.cmpi eq, %12, %21 : vector<64x64xi32>
    %cst_14 = arith.constant 1.000000e+00 : f32
    %cst_15 = arith.constant 0.000000e+00 : f32
    %23 = vector.broadcast %cst_14 : f32 to vector<64x64xf32>
    %24 = vector.broadcast %cst_15 : f32 to vector<64x64xf32>
    %25 = arith.select %22, %23, %24 : vector<64x64xi1>, vector<64x64xf32>
    %26 = arith.truncf %25 : vector<64x64xf32> to vector<64x64xbf16>
    %c0_16 = arith.constant 0 : index
    %c0_17 = arith.constant 0 : index
    %c0_18 = arith.constant 0 : index
    %27 = vector.load %arg9[%c0_16, %c0_17, %c0_18] : memref<8x8x128xf32, #tpu.memory_space<vmem>>, vector<8x8x128xf32>
    %28 = vector.shape_cast %27 : vector<8x8x128xf32> to vector<64x128xf32>
    %29 = arith.truncf %28 : vector<64x128xf32> to vector<64x128xbf16>
    %c0_19 = arith.constant 0 : index
    %c0_20 = arith.constant 0 : index
    %c0_21 = arith.constant 0 : index
    %30 = vector.load %arg10[%c0_19, %c0_20, %c0_21] : memref<8x8x128xf32, #tpu.memory_space<vmem>>, vector<8x8x128xf32>
    %31 = vector.shape_cast %30 : vector<8x8x128xf32> to vector<64x128xf32>
    %32 = arith.truncf %31 : vector<64x128xf32> to vector<64x128xbf16>
    %cst_22 = arith.constant dense<0.000000e+00> : vector<64x128xf32>
    %33 = tpu.matmul %19, %29, %cst_22 {dimension_numbers = #tpu.dot_dimension_numbers<[1], [0], [0], [1], [0, 0, 1, 1], [], []>} : vector<64x64xbf16>, vector<64x128xbf16>, vector<64x128xf32> -> vector<64x128xf32>
    %c0_23 = arith.constant 0 : index
    %c0_24 = arith.constant 0 : index
    %34 = vector.load %arg8[%c0_23, %c0_24] : memref<64x256xf32, #tpu.memory_space<vmem>>, vector<64x128xf32>
    tpu.vector_store %arg8[%c0_23, %c0_24], %33 {strides = array<i32>} : memref<64x256xf32, #tpu.memory_space<vmem>>, vector<64x128xf32>,
    %cst_25 = arith.constant dense<0.000000e+00> : vector<64x128xf32>
    %35 = tpu.matmul %26, %32, %cst_25 {dimension_numbers = #tpu.dot_dimension_numbers<[1], [0], [0], [1], [0, 0, 1, 1], [], []>} : vector<64x64xbf16>, vector<64x128xbf16>, vector<64x128xf32> -> vector<64x128xf32>
    %c0_26 = arith.constant 0 : index
    %c128 = arith.constant 128 : index
    %36 = vector.load %arg8[%c0_26, %c128] : memref<64x256xf32, #tpu.memory_space<vmem>>, vector<64x128xf32>
    tpu.vector_store %arg8[%c0_26, %c128], %35 {strides = array<i32>} : memref<64x256xf32, #tpu.memory_space<vmem>>, vector<64x128xf32>,
    return
  }
  func.func @transform_0(%arg0: i32, %arg1: memref<1xi32, #tpu.memory_space<smem>>) -> (i32, i32, i32) {
    %c0_i32 = arith.constant 0 : i32
    %c0_i32_0 = arith.constant 0 : i32
    %c0_i32_1 = arith.constant 0 : i32
    return %c0_i32, %arg0, %c0_i32_0 : i32, i32, i32
  }
  func.func @transform_1(%arg0: i32, %arg1: memref<1xi32, #tpu.memory_space<smem>>) -> (i32, i32) {
    %c0_i32 = arith.constant 0 : i32
    %c0_i32_0 = arith.constant 0 : i32
    %c0_i32_1 = arith.constant 0 : i32
    return %c0_i32, %c0_i32_0 : i32, i32
  }
  func.func @transform_2(%arg0: i32, %arg1: memref<1xi32, #tpu.memory_space<smem>>) -> (i32, i32) {
    %c0_i32 = arith.constant 0 : i32
    %c0_i32_0 = arith.constant 0 : i32
    %c0_i32_1 = arith.constant 0 : i32
    return %c0_i32, %c0_i32_0 : i32, i32
  }
  func.func @transform_3(%arg0: i32, %arg1: memref<1xi32, #tpu.memory_space<smem>>) -> (i32, i32) {
    %c0_i32 = arith.constant 0 : i32
    %c0_i32_0 = arith.constant 0 : i32
    return %arg0, %c0_i32 : i32, i32
  }
  func.func @transform_4(%arg0: i32, %arg1: memref<1xi32, #tpu.memory_space<smem>>) -> (i32, i32) {
    %c0_i32 = arith.constant 0 : i32
    %c0_i32_0 = arith.constant 0 : i32
    return %arg0, %c0_i32 : i32, i32
  }
  func.func @transform_5(%arg0: i32, %arg1: memref<1xi32, #tpu.memory_space<smem>>) -> (i32, i32) {
    %c0_i32 = arith.constant 0 : i32
    %c0_i32_0 = arith.constant 0 : i32
    return %arg0, %c0_i32 : i32, i32
  }
  func.func @transform_6(%arg0: i32, %arg1: memref<1xi32, #tpu.memory_space<smem>>) -> (i32, i32) {
    %c0_i32 = arith.constant 0 : i32
    %c0_i32_0 = arith.constant 0 : i32
    return %arg0, %c0_i32 : i32, i32
  }
}

</mosaic_0001>

<bundles_post_ra>
// kernel: pooling_rnn_global.1
= control target key start
LH: loop header
LB: loop body
LE: loop exit
PB: predicated region body
PF: predicated region fallthrough
CT: control target
= control target key end

     0   :  { %s1278_s0 = inlined_call_operand.<no memory space> [shape: s32[1], index: 0, kind: input, shape index: {}]   ;;  %s1279_s1 = inlined_call_operand.vmem [shape: bf16[8,8,256], index: 1, kind: input, shape index: {}]   ;;  %s1280_s2 = inlined_call_operand.vmem [shape: bf16[128,128], index: 2, kind: input, shape index: {}]   ;;  %s1281_s4 = inlined_call_operand.vmem [shape: s32[8,1], index: 4, kind: input, shape index: {}]   ;;  %s1282_s5 = inlined_call_operand.vmem [shape: s32[64,1], index: 5, kind: input, shape index: {}]   ;;  %s1283_s6 = inlined_call_operand.vmem [shape: s32[64,1], index: 6, kind: input, shape index: {}]   ;;  %s1284_s7 = inlined_call_operand.vmem [shape: f32[64,256], index: 7, kind: output, shape index: {}]   ;;  %s1285_s3 = inlined_call_operand.vmem [shape: bf16[128,128], index: 3, kind: input, shape index: {}]  }
   0x1   :  { %v900_v0 = vld [vmem:[%s1281_s4] sm:$0xff]  ;;  %v915_v3 = vld [vmem:[%s1280_s2 + $0x8] sm:$0xf]  ;;  %v920_v4 = vld [vmem:[%s1280_s2 + $0xc] sm:$0xf]  ;;  %p618_p0 = scmp.ge.s32.totalorder %s1278_s0, 8 }
   0x2   :  { %v905_v1 = vld [vmem:[%s1280_s2] sm:$0xf]  ;;  %v910_v2 = vld [vmem:[%s1280_s2 + $0x4] sm:$0xf]  ;;  %v925_v5 = vld [vmem:[%s1280_s2 + $0x10] sm:$0xf]  ;;  %s835_s20 = smov (!%p618_p0), %s1278_s0  }
   0x3   :  { %v930_v6 = vld [vmem:[%s1280_s2 + $0x14] sm:$0xf]  ;;  %v935_v7 = vld [vmem:[%s1280_s2 + $0x18] sm:$0xf]  ;;  %v940_v8 = vld [vmem:[%s1280_s2 + $0x1c] sm:$0xf] }
   0x4   :  { %v945_v9 = vld [vmem:[%s1280_s2 + $0x20] sm:$0xf]  ;;  %v950_v10 = vld [vmem:[%s1280_s2 + $0x24] sm:$0xf]  ;;  %v955_v11 = vld [vmem:[%s1280_s2 + $0x28] sm:$0xf] }
   0x5   :  { %v960_v12 = vld [vmem:[%s1280_s2 + $0x2c] sm:$0xf]  ;;  %v965_v13 = vld [vmem:[%s1280_s2 + $0x30] sm:$0xf]  ;;  %v970_v14 = vld [vmem:[%s1280_s2 + $0x34] sm:$0xf] }
   0x6   :  { %v975_v15 = vld [vmem:[%s1280_s2 + $0x38] sm:$0xf]  ;;  %v980_v16 = vld [vmem:[%s1280_s2 + $0x3c] sm:$0xf]  ;;  %v985_v17 = vld [vmem:[%s1285_s3] sm:$0xf] }
   0x7   :  { %v990_v18 = vld [vmem:[%s1285_s3 + $0x4] sm:$0xf]  ;;  %v995_v19 = vld [vmem:[%s1285_s3 + $0x8] sm:$0xf]  ;;  %v1000_v20 = vld [vmem:[%s1285_s3 + $0xc] sm:$0xf] }
   0x8   :  { %v1005_v21 = vld [vmem:[%s1285_s3 + $0x10] sm:$0xf]  ;;  %v1010_v22 = vld [vmem:[%s1285_s3 + $0x14] sm:$0xf]  ;;  %v1015_v23 = vld [vmem:[%s1285_s3 + $0x18] sm:$0xf] }
   0x9   :  { %v1020_v24 = vld [vmem:[%s1285_s3 + $0x1c] sm:$0xf]  ;;  %v1025_v25 = vld [vmem:[%s1285_s3 + $0x20] sm:$0xf]  ;;  %v1030_v26 = vld [vmem:[%s1285_s3 + $0x24] sm:$0xf] }
   0xa   :  { %v1035_v27 = vld [vmem:[%s1285_s3 + $0x28] sm:$0xf]  ;;  %v1040_v28 = vld [vmem:[%s1285_s3 + $0x2c] sm:$0xf]  ;;  %v1045_v29 = vld [vmem:[%s1285_s3 + $0x30] sm:$0xf] }
   0xb   :  { %v1050_v30 = vld [vmem:[%s1285_s3 + $0x34] sm:$0xf]  ;;  %v1055_v31 = vld [vmem:[%s1285_s3 + $0x38] sm:$0xf]  ;;  %v1060_v32 = vld [vmem:[%s1285_s3 + $0x3c] sm:$0xf] }
   0xc   :  { %619 = sbr.rel (%p618_p0) target bundleno = 26 (0x1a), region = 58 }
  0x11 LB: > { %s633_s21 = sshll.u32 %s837_s20, 3  ;;  %v851_v33 = vmov 0.0   ;;  %s63_s20 = sadd.s32 1, %s837_s20   ;;  %s837_s20 = sphi %s835_s20, %s63_s20  }
  0x12   : > { %s67_s22 = scalar_lea.vmem [#allocation2], %s633_s21  ;;  %s69_s23 = scalar_lea.vmem [#allocation3], %s633_s21 }
  0x13   : > { %68 = vst [vmem:[%s67_s22] sm:$0xff] %v851_v33  ;;  %70 = vst [vmem:[%s69_s23] sm:$0xff] %v851_v33  ;;  %p62_p1 = scmp.ge.s32.totalorder %s63_s20, 8 }
  0x15   :  { %65 = sbr.rel (!%p62_p1) target bundleno = 17 (0x11), region = 64 }
  0x1a PF:  { %p634_p2 = scmp.le.s32.totalorder %s1278_s0, 0 }
  0x1b   :  { %s1075_s25 = smov (!%p634_p2), 0  }
  0x1c   :  { %626 = sbr.rel (%p634_p2) target bundleno = 279 (0x117), region = 69 }
  0x21   :  { %v1071_v34 = vmov 0.0   ;;  %v1073_v35 = vmov 0.0  }
  0x22 LB: > { %v647_v36 = vcombine.low %v975_v15, %v980_v16  ;;  %v655_v37 = vcombine.low %v1055_v31, %v1060_v32  ;;  %s635_s28 = sadd.s32 4294967295, %s1278_s0  ;;  %v852_v38 = vmov 0.0   ;;  %v646_v39 = vcombine.low %v965_v13, %v970_v14  ;;  %s666_s4 = sshll.u32 %s849_s25, 3  ;;  %s849_s25 = sphi %s1075_s25, %s74_s25   ;;  %v845_v35 = vphi %v1073_v35, %v298_v35   ;;  %v841_v34 = vphi %v1071_v34, %v299_v34  }
  0x23   : > { %702 = vmatprep.subr.bf16.mxu0 %v852_v38  ;;  %722 = vmatprep.subr.bf16.mxu1 %v852_v38  ;;  %v654_v40 = vcombine.low %v1045_v29, %v1050_v30  ;;  %s1098_s29 = ssub.s32 %s635_s28, %s849_s25  ;;  %vm853_vm0 = vmmov 0   ;;  %v276_v41 = vstv %s849_s25  ;;  %v645_v42 = vcombine.low %v955_v11, %v960_v12  ;;  %s83_s13 = scalar_lea.vmem %s1279_s1, %s666_s4 }
  0x24   : > { %703 = vmatpush3.bf16.msra.mxu0 %v647_v36  ;;  %723 = vmatpush3.bf16.msra.mxu1 %v655_v37  ;;  %v653_v43 = vcombine.low %v1035_v27, %v1040_v28  ;;  %vm277_vm1 = vcmp.lt.s32.totalorder %v276_v41, %v900_v0  ;;  %v278_v44 = vstv %s1098_s29  ;;  %v854_v45 = vmov 0   ;;  %s667_s30 = sshll.u32 %s1098_s29, 3  ;;  %v84_v62 = vld [vmem:[%s83_s13] sm:$0xf]  ;;  %s287_s14 = scalar_lea.vmem [#allocation2], %s666_s4 }
  0x25   : > { %704 = vmatprep.subr.bf16.mxu0 %v852_v38  ;;  %724 = vmatprep.subr.bf16.mxu1 %v852_v38  ;;  %v280_v46 = vsel %vm277_vm1, 1, %v854_v45  ;;  %vm279_vm2 = vcmp.lt.s32.totalorder %v278_v44, %v900_v0  ;;  %v644_v47 = vcombine.low %v945_v9, %v950_v10  ;;  %v652_v48 = vcombine.low %v1025_v25, %v1030_v26  ;;  %s87_s10 = scalar_lea.vmem %s1279_s1, %s667_s30  ;;  %s296_s15 = scalar_lea.vmem [#allocation3], %s667_s30 }
  0x26   : > { %718 = vmatprep.mubr.msk.bf16.mxu0 %vm853_vm0, %v852_v38  ;;  %738 = vmatprep.mubr.msk.bf16.mxu1 %vm853_vm0, %v852_v38  ;;  %v289_v49 = vsel %vm279_vm2, 1, %v854_v45  ;;  %v643_v50 = vcombine.low %v935_v7, %v940_v8  ;;  %v651_v51 = vcombine.low %v1015_v23, %v1020_v24  ;;  %v642_v52 = vcombine.low %v925_v5, %v930_v6  ;;  %v88_v60 = vld [vmem:[%s87_s10] sm:$0xff]  ;;  %s74_s25 = sadd.s32 1, %s849_s25  }
  0x27   : > { %812 = vset.pattern.permute.xlu0 %v854_v45  ;;  %v650_v53 = vcombine.low %v1005_v21, %v1010_v22  ;;  %v641_v54 = vcombine.low %v915_v3, %v920_v4  ;;  %v649_v55 = vcombine.low %v995_v19, %v1000_v20  ;;  %v640_v56 = vcombine.low %v905_v1, %v910_v2  ;;  %p73_p3 = scmp.ge.s32.totalorder %s74_s25, %s1278_s0 }
  0x28   : > { %705 = vmatpush3.bf16.msra.mxu0 %v646_v39  ;;  %725 = vmatpush3.bf16.msra.mxu1 %v654_v40  ;;  %v648_v57 = vcombine.low %v985_v17, %v990_v18  ;;  %v90_v58 = vpack.c.bf16 %v845_v35, %v845_v35  ;;  %v184_v59 = vpack.c.bf16 %v841_v34, %v841_v34  ;;  %v181_v61 = vrot.slane %v88_v60, 4 }
  0x29   : > { %706 = vmatprep.subr.bf16.mxu0 %v852_v38  ;;  %726 = vmatprep.subr.bf16.mxu1 %v852_v38  ;;  %v89_v63 = vunpack.c.l.bf16 %v84_v62 }
  0x2a   : > { %282 = vperm.xlu0 %812, %v280_v46   ;;  %v183_v33 = vunpack.c.l.bf16 %v181_v61 }
  0x2c   : > { %707 = vmatpush3.bf16.msra.mxu0 %v645_v42  ;;  %727 = vmatpush3.bf16.msra.mxu1 %v653_v43 }
  0x2d   : > { %708 = vmatprep.subr.bf16.mxu0 %v852_v38  ;;  %728 = vmatprep.subr.bf16.mxu1 %v852_v38 }
  0x2e   : > { %291 = vperm.xlu0 %812, %v289_v49  }
  0x30   : > { %709 = vmatpush3.bf16.msra.mxu0 %v644_v47  ;;  %729 = vmatpush3.bf16.msra.mxu1 %v652_v48 }
  0x31   : > { %710 = vmatprep.subr.bf16.mxu0 %v852_v38  ;;  %730 = vmatprep.subr.bf16.mxu1 %v852_v38 }
  0x34   : > { %711 = vmatpush3.bf16.msra.mxu0 %v643_v50  ;;  %731 = vmatpush3.bf16.msra.mxu1 %v651_v51 }
  0x35   : > { %712 = vmatprep.subr.bf16.mxu0 %v852_v38  ;;  %732 = vmatprep.subr.bf16.mxu1 %v852_v38 }
  0x38   : > { %713 = vmatpush3.bf16.msra.mxu0 %v642_v52  ;;  %733 = vmatpush3.bf16.msra.mxu1 %v650_v53 }
  0x39   : > { %714 = vmatprep.subr.bf16.mxu0 %v852_v38  ;;  %734 = vmatprep.subr.bf16.mxu1 %v852_v38 }
  0x3c   : > { %715 = vmatpush3.bf16.msra.mxu0 %v641_v54  ;;  %735 = vmatpush3.bf16.msra.mxu1 %v649_v55 }
  0x3d   : > { %716 = vmatprep.subr.bf16.mxu0 %v852_v38  ;;  %736 = vmatprep.subr.bf16.mxu1 %v852_v38 }
  0x40   : > { %717 = vmatpush3.bf16.msra.mxu0 %v640_v56  ;;  %737 = vmatpush3.bf16.msra.mxu1 %v648_v57 }
  0x43   : > { %719 = vmatmul.mubr.bf16.vlgmr.msra.gmra.mxu0 %v90_v58  ;;  %739 = vmatmul.mubr.bf16.vlgmr.msra.gmra.mxu1 %v184_v59 }
  0xa5   : > { %v283_v46 = vpop.permute.xlu0 %282 }
  0xa6   : > { %vm284_vm3 = vcmp.eq.s32.totalorder %v283_v46, 1 }
  0xa9   : > { %v292_v47 = vpop.permute.xlu0 %291 }
  0xaa   : > { %vm293_vm4 = vcmp.eq.s32.totalorder %v292_v47, 1 }
 0x103   : > { %v173_v36 = vpop.f32.mrf.mxu0  ;;  %v267_v37 = vpop.f32.mrf.mxu1 }
 0x104   : > { %v179_v38 = vadd.f32 %v173_v36, %v89_v63  ;;  %v273_v39 = vadd.f32 %v267_v37, %v183_v33 }
 0x105   : > { %v720_v40 = vpop.f32.mrf.mxu0  ;;  %v740_v41 = vpop.f32.mrf.mxu1 }
 0x106   : > { %813 = vtanh.f32 %v179_v38 }
 0x107   : > { %815 = vtanh.f32 %v273_v39  ;;  %v176_v42 = vpop.f32.mrf.mxu0  ;;  %v270_v43 = vpop.f32.mrf.mxu1 }
 0x109   : > { %v721_v44 = vpop.f32.mrf.mxu0  ;;  %v741_v45 = vpop.f32.mrf.mxu1 }
 0x112   :  { %76 = sbr.rel (!%p73_p3) target bundleno = 34 (0x22), region = 75 }
 0x113   : > { %v814_v48 = vpop.eup %813 }
 0x114   : > { %v816_v49 = vpop.eup %815  ;;  %v285_v50 = vsel %vm284_vm3, %v814_v48, 0.0  ;;  %v298_v35 = vsel %vm284_vm3, %v814_v48, %v845_v35  }
 0x115   : > { %288 = vst [vmem:[%s287_s14] sm:$0xff] %v285_v50  ;;  %v294_v51 = vsel %vm293_vm4, %v816_v49, 0.0  ;;  %v299_v34 = vsel %vm293_vm4, %v816_v49, %v841_v34  }
 0x116   : > { %297 = vst [vmem:[%s296_s15] sm:$0xff] %v294_v51 }
 0x117 PF:  { %v354_v52 = vld [vmem:[%s1283_s6] sm:$0xff]  ;;  %v855_v54 = vmov 0   ;;  %v355_v35 = vld [vmem:[%s1283_s6 + $0x8] sm:$0xff]  ;;  %v305_v1 = vld [vmem:[%s1282_s5 + $0x18] sm:$0xff]  ;;  %v300_v58 = vlaneseq  ;;  %vm430_vm9 = vcmask 523264   ;;  %v856_v33 = vmov 0.0  }
 0x118   :  { %v302_v53 = vld [vmem:[%s1282_s5] sm:$0xff]  ;;  %818 = vset.pattern.permute.xlu1 %v855_v54  ;;  %817 = vset.pattern.permute.xlu0 %v855_v54  ;;  %v303_v0 = vld [vmem:[%s1282_s5 + $0x8] sm:$0xff]  ;;  %v304_v8 = vld [vmem:[%s1282_s5 + $0x10] sm:$0xff] }
 0x119   :  { %363 = vperm.xlu1 %818, %v354_v52   ;;  %311 = vperm.xlu0 %817, %v302_v53   ;;  %v357_v19 = vld [vmem:[%s1283_s6 + $0x18] sm:$0xff]  ;;  %v356_v20 = vld [vmem:[%s1283_s6 + $0x10] sm:$0xff]  ;;  %v307_v27 = vld [vmem:[%s1282_s5 + $0x28] sm:$0xff]  ;;  %v1204_v59 = vand.u32 127, %v300_v58 }
 0x11a   :  { %v306_v28 = vld [vmem:[%s1282_s5 + $0x20] sm:$0xff]  ;;  %v359_v31 = vld [vmem:[%s1283_s6 + $0x28] sm:$0xff]  ;;  %v309_v34 = vld [vmem:[%s1282_s5 + $0x38] sm:$0xff] }
 0x11b   :  { %v358_v32 = vld [vmem:[%s1283_s6 + $0x20] sm:$0xff]  ;;  %v308_v55 = vld [vmem:[%s1282_s5 + $0x30] sm:$0xff]  ;;  %v361_v56 = vld [vmem:[%s1283_s6 + $0x38] sm:$0xff] }
 0x11c   :  { %v412_v2 = vld [vmem:[#allocation2 + $0x30] sm:$0xff]  ;;  %v413_v3 = vld [vmem:[#allocation2 + $0x38] sm:$0xff]  ;;  %v410_v5 = vld [vmem:[#allocation2 + $0x20] sm:$0xff] }
 0x11d   :  { %366 = vperm.xlu1 %818, %v355_v35   ;;  %314 = vperm.xlu0 %817, %v303_v0   ;;  %v417_v4 = vpack.c.bf16 %v413_v3, %v412_v2  ;;  %v411_v6 = vld [vmem:[#allocation2 + $0x28] sm:$0xff]  ;;  %v424_v7 = vld [vmem:[#allocation3 + $0x30] sm:$0xff]  ;;  %v425_v10 = vld [vmem:[#allocation3 + $0x38] sm:$0xff] }
 0x11e   :  { %v416_v9 = vpack.c.bf16 %v411_v6, %v410_v5  ;;  %v408_v11 = vld [vmem:[#allocation2 + $0x10] sm:$0xff]  ;;  %v429_v12 = vpack.c.bf16 %v425_v10, %v424_v7  ;;  %v409_v13 = vld [vmem:[#allocation2 + $0x18] sm:$0xff]  ;;  %v422_v14 = vld [vmem:[#allocation3 + $0x20] sm:$0xff] }
 0x11f   :  { %742 = vmatprep.subr.bf16.mxu0 %v417_v4  ;;  %v423_v15 = vld [vmem:[#allocation3 + $0x28] sm:$0xff]  ;;  %v420_v17 = vld [vmem:[#allocation3 + $0x10] sm:$0xff]  ;;  %v421_v18 = vld [vmem:[#allocation3 + $0x18] sm:$0xff]  ;;  %v415_v21 = vpack.c.bf16 %v409_v13, %v408_v11 }
 0x120   :  { %743 = vmatpush3.bf16.msra.mxu0 %v417_v4  ;;  %v428_v16 = vpack.c.bf16 %v423_v15, %v422_v14  ;;  %758 = vmatprep.subr.bf16.mxu1 %v429_v12  ;;  %v406_v22 = vld [vmem:[#allocation2] sm:$0xff]  ;;  %v407_v23 = vld [vmem:[#allocation2 + $0x8] sm:$0xff]  ;;  %v427_v24 = vpack.c.bf16 %v421_v18, %v420_v17  ;;  %v360_v57 = vld [vmem:[%s1283_s6 + $0x30] sm:$0xff] }
 0x121   :  { %320 = vperm.xlu1 %818, %v305_v1   ;;  %317 = vperm.xlu0 %817, %v304_v8   ;;  %v418_v25 = vld [vmem:[#allocation3] sm:$0xff]  ;;  %v419_v26 = vld [vmem:[#allocation3 + $0x8] sm:$0xff]  ;;  %v414_v29 = vpack.c.bf16 %v407_v23, %v406_v22 }
 0x122   :  { %744 = vmatprep.subr.bf16.mxu0 %v416_v9  ;;  %759 = vmatpush3.bf16.msra.mxu1 %v429_v12  ;;  %v426_v30 = vpack.c.bf16 %v419_v26, %v418_v25 }
 0x123   :  { %760 = vmatprep.subr.bf16.mxu1 %v428_v16 }
 0x124   :  { %745 = vmatpush3.bf16.msra.mxu0 %v416_v9 }
 0x125   :  { %372 = vperm.xlu1 %818, %v357_v19   ;;  %369 = vperm.xlu0 %817, %v356_v20  }
 0x126   :  { %746 = vmatprep.subr.bf16.mxu0 %v415_v21  ;;  %761 = vmatpush3.bf16.msra.mxu1 %v428_v16 }
 0x127   :  { %762 = vmatprep.subr.bf16.mxu1 %v427_v24 }
 0x128   :  { %747 = vmatpush3.bf16.msra.mxu0 %v415_v21 }
 0x129   :  { %326 = vperm.xlu1 %818, %v307_v27   ;;  %323 = vperm.xlu0 %817, %v306_v28  }
 0x12a   :  { %748 = vmatprep.subr.bf16.mxu0 %v414_v29  ;;  %763 = vmatpush3.bf16.msra.mxu1 %v427_v24 }
 0x12b   :  { %764 = vmatprep.subr.bf16.mxu1 %v426_v30 }
 0x12c   :  { %749 = vmatpush3.bf16.msra.mxu0 %v414_v29 }
 0x12d   :  { %378 = vperm.xlu1 %818, %v359_v31   ;;  %375 = vperm.xlu0 %817, %v358_v32  }
 0x12e   :  { %765 = vmatpush3.bf16.msra.mxu1 %v426_v30 }
 0x131   :  { %332 = vperm.xlu1 %818, %v309_v34   ;;  %329 = vperm.xlu0 %817, %v308_v55  }
 0x135   :  { %384 = vperm.xlu1 %818, %v361_v56   ;;  %381 = vperm.xlu0 %817, %v360_v57  }
 0x194   :  { %v364_v60 = vpop.permute.xlu1 %363  ;;  %v312_v61 = vpop.permute.xlu0 %311 }
 0x195   :  { %vm386_vm5 = vcmp.eq.s32.totalorder %v1204_v59, %v364_v60  ;;  %vm334_vm6 = vcmp.eq.s32.totalorder %v1204_v59, %v312_v61 }
 0x196   :  { %v394_v36 = vsel %vm386_vm5, 1.0, %v856_v33  ;;  %v342_v37 = vsel %vm334_vm6, 1.0, %v856_v33 }
 0x198   :  { %v367_v62 = vpop.permute.xlu1 %366  ;;  %v315_v63 = vpop.permute.xlu0 %314 }
 0x199   :  { %vm387_vm7 = vcmp.eq.s32.totalorder %v1204_v59, %v367_v62  ;;  %vm335_vm8 = vcmp.eq.s32.totalorder %v1204_v59, %v315_v63 }
 0x19a   :  { %v395_v38 = vsel %vm387_vm7, 1.0, %v856_v33  ;;  %v343_v39 = vsel %vm335_vm8, 1.0, %v856_v33 }
 0x19b   :  { %v350_v40 = vpack.c.bf16 %v343_v39, %v342_v37  ;;  %v402_v41 = vpack.c.bf16 %v395_v38, %v394_v36 }
 0x19c   :  { %v321_v42 = vpop.permute.xlu1 %320  ;;  %v318_v43 = vpop.permute.xlu0 %317 }
 0x19d   :  { %vm337_vm10 = vcmp.eq.s32.totalorder %v1204_v59, %v321_v42  ;;  %vm336_vm11 = vcmp.eq.s32.totalorder %v1204_v59, %v318_v43  ;;  %750 = vmatprep.mubr.msk.bf16.mxu0 %vm430_vm9, %v350_v40  ;;  %766 = vmatprep.mubr.msk.bf16.mxu1 %vm430_vm9, %v402_v41 }
 0x19e   :  { %v345_v44 = vsel %vm337_vm10, 1.0, %v856_v33  ;;  %v344_v45 = vsel %vm336_vm11, 1.0, %v856_v33 }
 0x19f   :  { %v351_v46 = vpack.c.bf16 %v345_v44, %v344_v45 }
 0x1a0   :  { %v373_v47 = vpop.permute.xlu1 %372  ;;  %v370_v48 = vpop.permute.xlu0 %369 }
 0x1a1   :  { %vm389_vm12 = vcmp.eq.s32.totalorder %v1204_v59, %v373_v47  ;;  %vm388_vm13 = vcmp.eq.s32.totalorder %v1204_v59, %v370_v48  ;;  %751 = vmatmul.mubr.msk.bf16.vlgmr.msra.gmra.mxu0 %vm430_vm9, %v351_v46 }
 0x1a2   :  { %v397_v49 = vsel %vm389_vm12, 1.0, %v856_v33  ;;  %v396_v50 = vsel %vm388_vm13, 1.0, %v856_v33 }
 0x1a3   :  { %v403_v51 = vpack.c.bf16 %v397_v49, %v396_v50 }
 0x1a4   :  { %v327_v52 = vpop.permute.xlu1 %326  ;;  %v324_v53 = vpop.permute.xlu0 %323 }
 0x1a5   :  { %vm339_vm14 = vcmp.eq.s32.totalorder %v1204_v59, %v327_v52  ;;  %vm338_vm15 = vcmp.eq.s32.totalorder %v1204_v59, %v324_v53  ;;  %767 = vmatmul.mubr.msk.bf16.vlgmr.msra.gmra.mxu1 %vm430_vm9, %v403_v51 }
 0x1a6   :  { %v347_v54 = vsel %vm339_vm14, 1.0, %v856_v33  ;;  %v346_v35 = vsel %vm338_vm15, 1.0, %v856_v33 }
 0x1a7   :  { %v352_v0 = vpack.c.bf16 %v347_v54, %v346_v35 }
 0x1a8   :  { %v379_v1 = vpop.permute.xlu1 %378  ;;  %v376_v2 = vpop.permute.xlu0 %375 }
 0x1a9   :  { %vm391_vm0 = vcmp.eq.s32.totalorder %v1204_v59, %v379_v1  ;;  %vm390_vm1 = vcmp.eq.s32.totalorder %v1204_v59, %v376_v2  ;;  %754 = vmatprep.mubr.msk.bf16.mxu0 %vm430_vm9, %v352_v0 }
 0x1aa   :  { %v399_v3 = vsel %vm391_vm0, 1.0, %v856_v33  ;;  %v398_v4 = vsel %vm390_vm1, 1.0, %v856_v33 }
 0x1ab   :  { %v404_v5 = vpack.c.bf16 %v399_v3, %v398_v4 }
 0x1ac   :  { %v333_v6 = vpop.permute.xlu1 %332  ;;  %v330_v7 = vpop.permute.xlu0 %329 }
 0x1ad   :  { %vm341_vm2 = vcmp.eq.s32.totalorder %v1204_v59, %v333_v6  ;;  %vm340_vm3 = vcmp.eq.s32.totalorder %v1204_v59, %v330_v7  ;;  %770 = vmatprep.mubr.msk.bf16.mxu1 %vm430_vm9, %v404_v5 }
 0x1ae   :  { %v349_v8 = vsel %vm341_vm2, 1.0, %v856_v33  ;;  %v348_v9 = vsel %vm340_vm3, 1.0, %v856_v33 }
 0x1af   :  { %v353_v10 = vpack.c.bf16 %v349_v8, %v348_v9 }
 0x1b0   :  { %v385_v11 = vpop.permute.xlu1 %384  ;;  %v382_v12 = vpop.permute.xlu0 %381 }
 0x1b1   :  { %vm393_vm4 = vcmp.eq.s32.totalorder %v1204_v59, %v385_v11  ;;  %vm392_vm5 = vcmp.eq.s32.totalorder %v1204_v59, %v382_v12  ;;  %755 = vmatmul.mubr.msk.bf16.gmra.mxu0 %vm430_vm9, %v353_v10 }
 0x1b2   :  { %v401_v13 = vsel %vm393_vm4, 1.0, %v856_v33  ;;  %v400_v14 = vsel %vm392_vm5, 1.0, %v856_v33 }
 0x1b3   :  { %v405_v15 = vpack.c.bf16 %v401_v13, %v400_v14 }
 0x1b5   :  { %771 = vmatmul.mubr.msk.bf16.gmra.mxu1 %vm430_vm9, %v405_v15 }
 0x261   :  { %v752_v16 = vpop.f32.mrf.mxu0 }
 0x262   :  { %510 = vst [vmem:[%s1284_s7 + $0x20] sm:$0xff] %v752_v16 }
 0x263   :  { %v477_v17 = vpop.f32.mrf.mxu0 }
 0x264   :  { %508 = vst [vmem:[%s1284_s7] sm:$0xff] %v477_v17 }
 0x265   :  { %v753_v18 = vpop.f32.mrf.mxu0  ;;  %v768_v19 = vpop.f32.mrf.mxu1 }
 0x266   :  { %511 = vst [vmem:[%s1284_s7 + $0x30] sm:$0xff] %v753_v18  ;;  %595 = vst [vmem:[%s1284_s7 + $0x28] sm:$0xff] %v768_v19 }
 0x267   :  { %v480_v20 = vpop.f32.mrf.mxu0  ;;  %v562_v21 = vpop.f32.mrf.mxu1 }
 0x268   :  { %509 = vst [vmem:[%s1284_s7 + $0x10] sm:$0xff] %v480_v20  ;;  %593 = vst [vmem:[%s1284_s7 + $0x8] sm:$0xff] %v562_v21 }
 0x269   :  { %v769_v22 = vpop.f32.mrf.mxu1 }
 0x26a   :  { %596 = vst [vmem:[%s1284_s7 + $0x38] sm:$0xff] %v769_v22 }
 0x26b   :  { %v565_v23 = vpop.f32.mrf.mxu1 }
 0x26c   :  { %594 = vst [vmem:[%s1284_s7 + $0x18] sm:$0xff] %v565_v23 }
 0x271   :  { %v756_v24 = vpop.f32.mrf.mxu0 }
 0x272   :  { %514 = vst [vmem:[%s1284_s7 + $0x60] sm:$0xff] %v756_v24 }
 0x273   :  { %v493_v25 = vpop.f32.mrf.mxu0 }
 0x274   :  { %512 = vst [vmem:[%s1284_s7 + $0x40] sm:$0xff] %v493_v25 }
 0x275   :  { %v757_v26 = vpop.f32.mrf.mxu0  ;;  %v772_v27 = vpop.f32.mrf.mxu1 }
 0x276   :  { %515 = vst [vmem:[%s1284_s7 + $0x70] sm:$0xff] %v757_v26  ;;  %599 = vst [vmem:[%s1284_s7 + $0x68] sm:$0xff] %v772_v27 }
 0x277   :  { %v496_v28 = vpop.f32.mrf.mxu0  ;;  %v578_v29 = vpop.f32.mrf.mxu1 }
 0x278   :  { %513 = vst [vmem:[%s1284_s7 + $0x50] sm:$0xff] %v496_v28  ;;  %597 = vst [vmem:[%s1284_s7 + $0x48] sm:$0xff] %v578_v29 }
 0x279   :  { %v773_v30 = vpop.f32.mrf.mxu1 }
 0x27a   :  { %600 = vst [vmem:[%s1284_s7 + $0x78] sm:$0xff] %v773_v30 }
 0x27b   :  { %v581_v31 = vpop.f32.mrf.mxu1 }
 0x27c   :  { %598 = vst [vmem:[%s1284_s7 + $0x58] sm:$0xff] %v581_v31 }

</bundles_post_ra>
